<compile_context>
chip_gen: v5e
topology: v5e:2x2
jax: 0.10.0
libtpu: 0.0.40
codegen_flags: <defaults>
</compile_context>

<pallas_src>
import math

import jax
import jax.numpy as jnp
import numpy as np
from jax.experimental import pallas as pl
from jax.experimental.pallas import tpu as pltpu


# ---------------------------------------------------------------------------
# Pallas kernel: one batch tile (BT elements) per grid step.
# ---------------------------------------------------------------------------
def _lstm_net2_kernel(x_ref,                              # (8, N)  N = BT*128
                      w5_ref, b5_ref,                     # (8, 3*8), (8, 1)
                      w6_ref, b6_ref,
                      w7_ref, b7_ref,
                      w8_ref, b8_ref,
                      mfirst_ref, mlast1_ref,             # (1, N) edge masks
                      mlast2_ref, mlast4_ref,
                      fcw_ref, fcb_ref,                   # (N, BT*8), (1, BT*8)
                      out_ref):                           # (1, BT*8)
    f32 = jnp.float32

    x = x_ref[...].astype(f32)                            # (8, N)
    n = x.shape[-1]
    m_first = mfirst_ref[...]                             # zero at element starts

    def conv(v, wp_ref, b_ref, d, m_last):
        # Fused 3-tap Conv1d(k=3, stride=1, pad=1) at dilation d (d tracks the
        # lazily-decimated maxpools).  One (Co, 3C) @ (3C, N) MXU matmul.
        x_m1 = pltpu.roll(v, d % n, axis=1) * m_first         # v[:, j-d], 0-padded
        x_p1 = pltpu.roll(v, (n - d) % n, axis=1) * m_last    # v[:, j+d], 0-padded
        taps = jnp.concatenate([x_m1, v, x_p1], axis=0)       # (3C, N)
        return jnp.dot(wp_ref[...], taps,
                       preferred_element_type=f32) + b_ref[...]

    def pool(v, d):
        # MaxPool1d(2) in dilated form: valid stride d -> 2d; pairs never cross
        # element boundaries because L is even and elements are 128-lane aligned.
        return jnp.maximum(v, pltpu.roll(v, (n - d) % n, axis=1))

    relu = lambda v: jnp.maximum(v, 0.0)

    y = conv(x, w5_ref, b5_ref, 1, mlast1_ref[...])        # conv_5   (stride 1)
    y = relu(pool(y, 1))                                   # pool, relu -> stride 2
    y = conv(y, w6_ref, b6_ref, 2, mlast2_ref[...])        # conv_6
    y = relu(pool(y, 2))                                   # pool, relu -> stride 4
    y = relu(conv(y, w7_ref, b7_ref, 4, mlast4_ref[...]))  # conv_7, relu
    y = relu(conv(y, w8_ref, b8_ref, 4, mlast4_ref[...]))  # conv_8, relu

    # y.mean([1]) : mean over the 8 channels -> (1, N); only stride-4 lanes matter.
    ym = jnp.sum(y, axis=0, keepdims=True) * (1.0 / y.shape[0])

    # fc_1 for the whole batch tile in one matmul; fcw is zero everywhere except
    # the 23 valid lanes of each element, so garbage lanes never leak.
    out = jnp.dot(ym, fcw_ref[...], preferred_element_type=f32) + fcb_ref[...]
    out_ref[...] = out.astype(out_ref.dtype)               # (1, BT*8) lane-dense store


# ---------------------------------------------------------------------------
# Wrapper: parameter packing, masks, BlockSpecs, pallas_call.
# ---------------------------------------------------------------------------
def lstm_network2_forward(inp, params, *, batch_tile=8):
    B, Cin, L = inp.shape
    assert L == 92, "fc_1 = Linear(23, 8) requires (L//2)//2 == 23, i.e. L == 92"
    assert Cin <= 8

    f32 = jnp.float32
    LP = 128                      # per-element length padded to one lane tile
    CP = 8                        # input channels padded to one sublane tile
    BT = min(B, batch_tile)       # batch elements per grid step
    G = pl.cdiv(B, BT)
    Bp = G * BT
    N = BT * LP

    # input: (B, Cin, L) -> (G, CP, BT*LP); channels on sublanes, batch*length on lanes
    x = inp.astype(f32)
    x = jnp.pad(x, ((0, Bp - B), (0, CP - Cin), (0, LP - L)))
    x = x.reshape(G, BT, CP, LP).transpose(0, 2, 1, 3).reshape(G, CP, N)

    # conv weights packed for the fused single-matmul conv: (Co, 3*Ci_pad)
    def pack_conv(w, ci_pad):
        w = w.astype(f32)
        w = jnp.pad(w, ((0, 0), (0, ci_pad - w.shape[1]), (0, 0)))
        return jnp.concatenate([w[:, :, 0], w[:, :, 1], w[:, :, 2]], axis=1)

    # edge masks, hoisted out of the kernel (one per distinct dilation)
    pos = np.arange(N) % LP
    m_first = jnp.asarray((pos != 0).astype(np.float32)[None, :])
    m_last = {d: jnp.asarray((pos != (L - d)).astype(np.float32)[None, :])
              for d in (1, 2, 4)}

    # fc_1 folded into one (N, BT*8) block-diagonal matrix, nonzero only at the
    # 23 valid (stride-4) lanes of each element; bias tiled to (1, BT*8).
    sel = np.zeros((LP, 23), np.float32)
    sel[np.arange(23) * 4, np.arange(23)] = 1.0
    per_elem = jnp.asarray(sel) @ jnp.transpose(params["fc1_w"]).astype(f32)  # (LP, 8)
    fc_block = jnp.kron(jnp.eye(BT, dtype=f32), per_elem)                     # (N, BT*8)
    fc_bias = jnp.tile(params["fc1_b"].astype(f32), BT).reshape(1, BT * 8)

    args = [
        x,
        pack_conv(params["w5"], CP), params["b5"].astype(f32).reshape(-1, 1),
        pack_conv(params["w6"], 8),  params["b6"].astype(f32).reshape(-1, 1),
        pack_conv(params["w7"], 8),  params["b7"].astype(f32).reshape(-1, 1),
        pack_conv(params["w8"], 8),  params["b8"].astype(f32).reshape(-1, 1),
        m_first, m_last[1], m_last[2], m_last[4],
        fc_block, fc_bias,
    ]

    def rep_spec(shape):
        nd = len(shape)
        return pl.BlockSpec(shape, lambda g, _nd=nd: (0,) * _nd)

    in_specs = [pl.BlockSpec((None, CP, N), lambda g: (g, 0, 0))] + \
               [rep_spec(a.shape) for a in args[1:]]

    out = pl.pallas_call(
        _lstm_net2_kernel,
        out_shape=jax.ShapeDtypeStruct((G, 1, BT * 8), jnp.float32),
        grid_spec=pltpu.PrefetchScalarGridSpec(
            num_scalar_prefetch=0,
            grid=(G,),
            in_specs=in_specs,
            out_specs=pl.BlockSpec((None, 1, BT * 8), lambda g: (g, 0, 0)),
        ),
        compiler_params=pltpu.CompilerParams(
            dimension_semantics=("parallel",)),   # batch tiles independent (2 TCs on v7x)
    )(*args)
    return out.reshape(Bp, 8)[:B]


# ---------------------------------------------------------------------------
# Deterministic parameter init (PyTorch-style uniform bounds, synthetic).
# ---------------------------------------------------------------------------
def init_params(key, in_ch):
    ks = jax.random.split(key, 5)

    def conv_init(k, co, ci, ksz):
        bound = 1.0 / math.sqrt(ci * ksz)
        k1, k2 = jax.random.split(k)
        w = jax.random.uniform(k1, (co, ci, ksz), jnp.float32, -bound, bound)
        b = jax.random.uniform(k2, (co,), jnp.float32, -bound, bound)
        return w, b

    def linear_init(k, out_f, in_f):
        bound = 1.0 / math.sqrt(in_f)
        k1, k2 = jax.random.split(k)
        w = jax.random.uniform(k1, (out_f, in_f), jnp.float32, -bound, bound)
        b = jax.random.uniform(k2, (out_f,), jnp.float32, -bound, bound)
        return w, b

    p = {}
    p["w5"], p["b5"] = conv_init(ks[0], 8, in_ch, 3)
    p["w6"], p["b6"] = conv_init(ks[1], 8, 8, 3)
    p["w7"], p["b7"] = conv_init(ks[2], 8, 8, 3)
    p["w8"], p["b8"] = conv_init(ks[3], 8, 8, 3)
    p["fc1_w"], p["fc1_b"] = linear_init(ks[4], 8, 23)
    return p


# ---------------------------------------------------------------------------
# Pure-JAX reference of the live path of lstm_network2.forward (for checking).
# ---------------------------------------------------------------------------
def reference_forward(inp, p):
    def conv1d(x, w, b):
        out = jax.lax.conv_general_dilated(
            x, w, window_strides=(1,), padding=((1, 1),),
            dimension_numbers=("NCH", "OIH", "NCH"))
        return out + b[None, :, None]

    def pool(x):
        B, C, L = x.shape
        return x[:, :, : (L // 2) * 2].reshape(B, C, L // 2, 2).max(axis=-1)

    relu = lambda v: jnp.maximum(v, 0.0)
    y = conv1d(inp, p["w5"], p["b5"])
    y = relu(pool(y))
    y = conv1d(y, p["w6"], p["b6"])
    y = relu(pool(y))
    y = relu(conv1d(y, p["w7"], p["b7"]))
    y = relu(conv1d(y, p["w8"], p["b8"]))
    ym = y.mean(axis=1)
    return ym @ p["fc1_w"].T + p["fc1_b"]


if __name__ == "__main__":
    key = jax.random.PRNGKey(0)
    kx, kp = jax.random.split(key)

    B, Cin, L = 2, 4, 92      # L=92 so (L//2)//2 == 23 == fc_1 input features
    inp = jax.random.normal(kx, (B, Cin, L), jnp.float32)
    params = init_params(kp, Cin)

    out = lstm_network2_forward(inp, params)
    out = jax.block_until_ready(out)
    assert out.shape == (B, 8)

    ref = reference_forward(inp, params)
    np.testing.assert_allclose(np.asarray(out), np.asarray(ref),
                               rtol=1e-4, atol=1e-4)
    print("KERNEL_OK")
</pallas_src>

<mosaic_0001>
module attributes {stable_mosaic.version = 11 : i64} {
  func.func @_lstm_net2_kernel(%arg0: i32, %arg1: memref<1x8x256xf32, #tpu.memory_space<vmem>>, %arg2: memref<8x24xf32, #tpu.memory_space<vmem>>, %arg3: memref<8x1xf32, #tpu.memory_space<vmem>>, %arg4: memref<8x24xf32, #tpu.memory_space<vmem>>, %arg5: memref<8x1xf32, #tpu.memory_space<vmem>>, %arg6: memref<8x24xf32, #tpu.memory_space<vmem>>, %arg7: memref<8x1xf32, #tpu.memory_space<vmem>>, %arg8: memref<8x24xf32, #tpu.memory_space<vmem>>, %arg9: memref<8x1xf32, #tpu.memory_space<vmem>>, %arg10: memref<1x256xf32, #tpu.memory_space<vmem>>, %arg11: memref<1x256xf32, #tpu.memory_space<vmem>>, %arg12: memref<1x256xf32, #tpu.memory_space<vmem>>, %arg13: memref<1x256xf32, #tpu.memory_space<vmem>>, %arg14: memref<256x16xf32, #tpu.memory_space<vmem>>, %arg15: memref<1x16xf32, #tpu.memory_space<vmem>>, %arg16: memref<1x1x16xf32, #tpu.memory_space<vmem>>) attributes {dimension_semantics = [#tpu.dimension_semantics<parallel>], iteration_bounds = array<i64: 1>, scalar_prefetch = 0 : i64, scratch_operands = 0 : i64, tpu.core_type = #tpu.core_type<tc>, window_params = [{transform_indices = @transform_0, window_bounds = array<i64: 1, 8, 256>}, {pipeline_mode = #tpu.pipeline_mode<synchronous>, transform_indices = @transform_1, window_bounds = array<i64: 8, 24>}, {pipeline_mode = #tpu.pipeline_mode<synchronous>, transform_indices = @transform_2, window_bounds = array<i64: 8, 1>}, {pipeline_mode = #tpu.pipeline_mode<synchronous>, transform_indices = @transform_3, window_bounds = array<i64: 8, 24>}, {pipeline_mode = #tpu.pipeline_mode<synchronous>, transform_indices = @transform_4, window_bounds = array<i64: 8, 1>}, {pipeline_mode = #tpu.pipeline_mode<synchronous>, transform_indices = @transform_5, window_bounds = array<i64: 8, 24>}, {pipeline_mode = #tpu.pipeline_mode<synchronous>, transform_indices = @transform_6, window_bounds = array<i64: 8, 1>}, {pipeline_mode = #tpu.pipeline_mode<synchronous>, transform_indices = @transform_7, window_bounds = array<i64: 8, 24>}, {pipeline_mode = #tpu.pipeline_mode<synchronous>, transform_indices = @transform_8, window_bounds = array<i64: 8, 1>}, {pipeline_mode = #tpu.pipeline_mode<synchronous>, transform_indices = @transform_9, window_bounds = array<i64: 1, 256>}, {pipeline_mode = #tpu.pipeline_mode<synchronous>, transform_indices = @transform_10, window_bounds = array<i64: 1, 256>}, {pipeline_mode = #tpu.pipeline_mode<synchronous>, transform_indices = @transform_11, window_bounds = array<i64: 1, 256>}, {pipeline_mode = #tpu.pipeline_mode<synchronous>, transform_indices = @transform_12, window_bounds = array<i64: 1, 256>}, {pipeline_mode = #tpu.pipeline_mode<synchronous>, transform_indices = @transform_13, window_bounds = array<i64: 256, 16>}, {pipeline_mode = #tpu.pipeline_mode<synchronous>, transform_indices = @transform_14, window_bounds = array<i64: 1, 16>}, {transform_indices = @transform_15, window_bounds = array<i64: 1, 1, 16>}]} {
    %c0 = arith.constant 0 : index
    %c0_0 = arith.constant 0 : index
    %c0_1 = arith.constant 0 : index
    %0 = vector.load %arg1[%c0, %c0_0, %c0_1] : memref<1x8x256xf32, #tpu.memory_space<vmem>>, vector<1x8x256xf32>
    %1 = vector.shape_cast %0 : vector<1x8x256xf32> to vector<8x256xf32>
    %c0_2 = arith.constant 0 : index
    %c0_3 = arith.constant 0 : index
    %2 = vector.load %arg10[%c0_2, %c0_3] : memref<1x256xf32, #tpu.memory_space<vmem>>, vector<1x256xf32>
    %c0_4 = arith.constant 0 : index
    %c0_5 = arith.constant 0 : index
    %3 = vector.load %arg11[%c0_4, %c0_5] : memref<1x256xf32, #tpu.memory_space<vmem>>, vector<1x256xf32>
    %c1_i32 = arith.constant 1 : i32
    %4 = tpu.dynamic_rotate %1 by %c1_i32 dim 1 : vector<8x256xf32>, i32 -> vector<8x256xf32>
    %5 = vector.broadcast %2 : vector<1x256xf32> to vector<8x256xf32>
    %6 = arith.mulf %4, %5 : vector<8x256xf32>
    %c255_i32 = arith.constant 255 : i32
    %7 = tpu.dynamic_rotate %1 by %c255_i32 dim 1 : vector<8x256xf32>, i32 -> vector<8x256xf32>
    %8 = vector.broadcast %3 : vector<1x256xf32> to vector<8x256xf32>
    %9 = arith.mulf %7, %8 : vector<8x256xf32>
    %10 = tpu.concatenate %6, %1, %9 in 0 : vector<8x256xf32>, vector<8x256xf32>, vector<8x256xf32> -> vector<24x256xf32>
    %c0_6 = arith.constant 0 : index
    %c0_7 = arith.constant 0 : index
    %11 = vector.load %arg2[%c0_6, %c0_7] : memref<8x24xf32, #tpu.memory_space<vmem>>, vector<8x24xf32>
    %cst = arith.constant dense<0.000000e+00> : vector<8x256xf32>
    %12 = tpu.matmul %11, %10, %cst {dimension_numbers = #tpu.dot_dimension_numbers<[1], [0], [0], [1], [0, 0, 1, 1], [], []>} : vector<8x24xf32>, vector<24x256xf32>, vector<8x256xf32> -> vector<8x256xf32>
    %c0_8 = arith.constant 0 : index
    %c0_9 = arith.constant 0 : index
    %13 = vector.load %arg3[%c0_8, %c0_9] : memref<8x1xf32, #tpu.memory_space<vmem>>, vector<8x1xf32>
    %14 = vector.broadcast %13 : vector<8x1xf32> to vector<8x256xf32>
    %15 = arith.addf %12, %14 : vector<8x256xf32>
    %c255_i32_10 = arith.constant 255 : i32
    %16 = tpu.dynamic_rotate %15 by %c255_i32_10 dim 1 : vector<8x256xf32>, i32 -> vector<8x256xf32>
    %17 = arith.maximumf %15, %16 : vector<8x256xf32>
    %cst_11 = arith.constant 0.000000e+00 : f32
    %18 = vector.broadcast %cst_11 : f32 to vector<8x256xf32>
    %19 = arith.maximumf %17, %18 : vector<8x256xf32>
    %c0_12 = arith.constant 0 : index
    %c0_13 = arith.constant 0 : index
    %20 = vector.load %arg12[%c0_12, %c0_13] : memref<1x256xf32, #tpu.memory_space<vmem>>, vector<1x256xf32>
    %c2_i32 = arith.constant 2 : i32
    %21 = tpu.dynamic_rotate %19 by %c2_i32 dim 1 : vector<8x256xf32>, i32 -> vector<8x256xf32>
    %22 = vector.broadcast %2 : vector<1x256xf32> to vector<8x256xf32>
    %23 = arith.mulf %21, %22 : vector<8x256xf32>
    %c254_i32 = arith.constant 254 : i32
    %24 = tpu.dynamic_rotate %19 by %c254_i32 dim 1 : vector<8x256xf32>, i32 -> vector<8x256xf32>
    %25 = vector.broadcast %20 : vector<1x256xf32> to vector<8x256xf32>
    %26 = arith.mulf %24, %25 : vector<8x256xf32>
    %27 = tpu.concatenate %23, %19, %26 in 0 : vector<8x256xf32>, vector<8x256xf32>, vector<8x256xf32> -> vector<24x256xf32>
    %c0_14 = arith.constant 0 : index
    %c0_15 = arith.constant 0 : index
    %28 = vector.load %arg4[%c0_14, %c0_15] : memref<8x24xf32, #tpu.memory_space<vmem>>, vector<8x24xf32>
    %cst_16 = arith.constant dense<0.000000e+00> : vector<8x256xf32>
    %29 = tpu.matmul %28, %27, %cst_16 {dimension_numbers = #tpu.dot_dimension_numbers<[1], [0], [0], [1], [0, 0, 1, 1], [], []>} : vector<8x24xf32>, vector<24x256xf32>, vector<8x256xf32> -> vector<8x256xf32>
    %c0_17 = arith.constant 0 : index
    %c0_18 = arith.constant 0 : index
    %30 = vector.load %arg5[%c0_17, %c0_18] : memref<8x1xf32, #tpu.memory_space<vmem>>, vector<8x1xf32>
    %31 = vector.broadcast %30 : vector<8x1xf32> to vector<8x256xf32>
    %32 = arith.addf %29, %31 : vector<8x256xf32>
    %c254_i32_19 = arith.constant 254 : i32
    %33 = tpu.dynamic_rotate %32 by %c254_i32_19 dim 1 : vector<8x256xf32>, i32 -> vector<8x256xf32>
    %34 = arith.maximumf %32, %33 : vector<8x256xf32>
    %cst_20 = arith.constant 0.000000e+00 : f32
    %35 = vector.broadcast %cst_20 : f32 to vector<8x256xf32>
    %36 = arith.maximumf %34, %35 : vector<8x256xf32>
    %c0_21 = arith.constant 0 : index
    %c0_22 = arith.constant 0 : index
    %37 = vector.load %arg13[%c0_21, %c0_22] : memref<1x256xf32, #tpu.memory_space<vmem>>, vector<1x256xf32>
    %c4_i32 = arith.constant 4 : i32
    %38 = tpu.dynamic_rotate %36 by %c4_i32 dim 1 : vector<8x256xf32>, i32 -> vector<8x256xf32>
    %39 = vector.broadcast %2 : vector<1x256xf32> to vector<8x256xf32>
    %40 = arith.mulf %38, %39 : vector<8x256xf32>
    %c252_i32 = arith.constant 252 : i32
    %41 = tpu.dynamic_rotate %36 by %c252_i32 dim 1 : vector<8x256xf32>, i32 -> vector<8x256xf32>
    %42 = vector.broadcast %37 : vector<1x256xf32> to vector<8x256xf32>
    %43 = arith.mulf %41, %42 : vector<8x256xf32>
    %44 = tpu.concatenate %40, %36, %43 in 0 : vector<8x256xf32>, vector<8x256xf32>, vector<8x256xf32> -> vector<24x256xf32>
    %c0_23 = arith.constant 0 : index
    %c0_24 = arith.constant 0 : index
    %45 = vector.load %arg6[%c0_23, %c0_24] : memref<8x24xf32, #tpu.memory_space<vmem>>, vector<8x24xf32>
    %cst_25 = arith.constant dense<0.000000e+00> : vector<8x256xf32>
    %46 = tpu.matmul %45, %44, %cst_25 {dimension_numbers = #tpu.dot_dimension_numbers<[1], [0], [0], [1], [0, 0, 1, 1], [], []>} : vector<8x24xf32>, vector<24x256xf32>, vector<8x256xf32> -> vector<8x256xf32>
    %c0_26 = arith.constant 0 : index
    %c0_27 = arith.constant 0 : index
    %47 = vector.load %arg7[%c0_26, %c0_27] : memref<8x1xf32, #tpu.memory_space<vmem>>, vector<8x1xf32>
    %48 = vector.broadcast %47 : vector<8x1xf32> to vector<8x256xf32>
    %49 = arith.addf %46, %48 : vector<8x256xf32>
    %cst_28 = arith.constant 0.000000e+00 : f32
    %50 = vector.broadcast %cst_28 : f32 to vector<8x256xf32>
    %51 = arith.maximumf %49, %50 : vector<8x256xf32>
    %c0_29 = arith.constant 0 : index
    %c0_30 = arith.constant 0 : index
    %52 = vector.load %arg13[%c0_29, %c0_30] : memref<1x256xf32, #tpu.memory_space<vmem>>, vector<1x256xf32>
    %c4_i32_31 = arith.constant 4 : i32
    %53 = tpu.dynamic_rotate %51 by %c4_i32_31 dim 1 : vector<8x256xf32>, i32 -> vector<8x256xf32>
    %54 = vector.broadcast %2 : vector<1x256xf32> to vector<8x256xf32>
    %55 = arith.mulf %53, %54 : vector<8x256xf32>
    %c252_i32_32 = arith.constant 252 : i32
    %56 = tpu.dynamic_rotate %51 by %c252_i32_32 dim 1 : vector<8x256xf32>, i32 -> vector<8x256xf32>
    %57 = vector.broadcast %52 : vector<1x256xf32> to vector<8x256xf32>
    %58 = arith.mulf %56, %57 : vector<8x256xf32>
    %59 = tpu.concatenate %55, %51, %58 in 0 : vector<8x256xf32>, vector<8x256xf32>, vector<8x256xf32> -> vector<24x256xf32>
    %c0_33 = arith.constant 0 : index
    %c0_34 = arith.constant 0 : index
    %60 = vector.load %arg8[%c0_33, %c0_34] : memref<8x24xf32, #tpu.memory_space<vmem>>, vector<8x24xf32>
    %cst_35 = arith.constant dense<0.000000e+00> : vector<8x256xf32>
    %61 = tpu.matmul %60, %59, %cst_35 {dimension_numbers = #tpu.dot_dimension_numbers<[1], [0], [0], [1], [0, 0, 1, 1], [], []>} : vector<8x24xf32>, vector<24x256xf32>, vector<8x256xf32> -> vector<8x256xf32>
    %c0_36 = arith.constant 0 : index
    %c0_37 = arith.constant 0 : index
    %62 = vector.load %arg9[%c0_36, %c0_37] : memref<8x1xf32, #tpu.memory_space<vmem>>, vector<8x1xf32>
    %63 = vector.broadcast %62 : vector<8x1xf32> to vector<8x256xf32>
    %64 = arith.addf %61, %63 : vector<8x256xf32>
    %cst_38 = arith.constant 0.000000e+00 : f32
    %65 = vector.broadcast %cst_38 : f32 to vector<8x256xf32>
    %66 = arith.maximumf %64, %65 : vector<8x256xf32>
    %cst_39 = arith.constant dense<0.000000e+00> : vector<256xf32>
    %67 = vector.multi_reduction <add>, %66, %cst_39 [0] : vector<8x256xf32> to vector<256xf32>
    %68 = vector.shape_cast %67 : vector<256xf32> to vector<1x256xf32>
    %cst_40 = arith.constant 1.250000e-01 : f32
    %69 = vector.broadcast %cst_40 : f32 to vector<1x256xf32>
    %70 = arith.mulf %68, %69 : vector<1x256xf32>
    %c0_41 = arith.constant 0 : index
    %c0_42 = arith.constant 0 : index
    %71 = vector.load %arg14[%c0_41, %c0_42] : memref<256x16xf32, #tpu.memory_space<vmem>>, vector<256x16xf32>
    %cst_43 = arith.constant dense<0.000000e+00> : vector<1x16xf32>
    %72 = tpu.matmul %70, %71, %cst_43 {dimension_numbers = #tpu.dot_dimension_numbers<[1], [0], [0], [1], [0, 0, 1, 1], [], []>} : vector<1x256xf32>, vector<256x16xf32>, vector<1x16xf32> -> vector<1x16xf32>
    %c0_44 = arith.constant 0 : index
    %c0_45 = arith.constant 0 : index
    %73 = vector.load %arg15[%c0_44, %c0_45] : memref<1x16xf32, #tpu.memory_space<vmem>>, vector<1x16xf32>
    %74 = arith.addf %72, %73 : vector<1x16xf32>
    %c0_46 = arith.constant 0 : index
    %c0_47 = arith.constant 0 : index
    %c0_48 = arith.constant 0 : index
    %75 = vector.load %arg16[%c0_46, %c0_47, %c0_48] : memref<1x1x16xf32, #tpu.memory_space<vmem>>, vector<1x1x16xf32>
    %76 = vector.shape_cast %75 : vector<1x1x16xf32> to vector<1x16xf32>
    %77 = vector.shape_cast %74 : vector<1x16xf32> to vector<1x1x16xf32>
    tpu.vector_store %arg16[%c0_46, %c0_47, %c0_48], %77 {strides = array<i32>} : memref<1x1x16xf32, #tpu.memory_space<vmem>>, vector<1x1x16xf32>,
    return
  }
  func.func @transform_0(%arg0: i32) -> (i32, i32, i32) {
    %c0_i32 = arith.constant 0 : i32
    %c0_i32_0 = arith.constant 0 : i32
    %c0_i32_1 = arith.constant 0 : i32
    return %arg0, %c0_i32, %c0_i32_0 : i32, i32, i32
  }
  func.func @transform_1(%arg0: i32) -> (i32, i32) {
    %c0_i32 = arith.constant 0 : i32
    %c0_i32_0 = arith.constant 0 : i32
    %c0_i32_1 = arith.constant 0 : i32
    return %c0_i32, %c0_i32_0 : i32, i32
  }
  func.func @transform_2(%arg0: i32) -> (i32, i32) {
    %c0_i32 = arith.constant 0 : i32
    %c0_i32_0 = arith.constant 0 : i32
    %c0_i32_1 = arith.constant 0 : i32
    return %c0_i32, %c0_i32_0 : i32, i32
  }
  func.func @transform_3(%arg0: i32) -> (i32, i32) {
    %c0_i32 = arith.constant 0 : i32
    %c0_i32_0 = arith.constant 0 : i32
    %c0_i32_1 = arith.constant 0 : i32
    return %c0_i32, %c0_i32_0 : i32, i32
  }
  func.func @transform_4(%arg0: i32) -> (i32, i32) {
    %c0_i32 = arith.constant 0 : i32
    %c0_i32_0 = arith.constant 0 : i32
    %c0_i32_1 = arith.constant 0 : i32
    return %c0_i32, %c0_i32_0 : i32, i32
  }
  func.func @transform_5(%arg0: i32) -> (i32, i32) {
    %c0_i32 = arith.constant 0 : i32
    %c0_i32_0 = arith.constant 0 : i32
    %c0_i32_1 = arith.constant 0 : i32
    return %c0_i32, %c0_i32_0 : i32, i32
  }
  func.func @transform_6(%arg0: i32) -> (i32, i32) {
    %c0_i32 = arith.constant 0 : i32
    %c0_i32_0 = arith.constant 0 : i32
    %c0_i32_1 = arith.constant 0 : i32
    return %c0_i32, %c0_i32_0 : i32, i32
  }
  func.func @transform_7(%arg0: i32) -> (i32, i32) {
    %c0_i32 = arith.constant 0 : i32
    %c0_i32_0 = arith.constant 0 : i32
    %c0_i32_1 = arith.constant 0 : i32
    return %c0_i32, %c0_i32_0 : i32, i32
  }
  func.func @transform_8(%arg0: i32) -> (i32, i32) {
    %c0_i32 = arith.constant 0 : i32
    %c0_i32_0 = arith.constant 0 : i32
    %c0_i32_1 = arith.constant 0 : i32
    return %c0_i32, %c0_i32_0 : i32, i32
  }
  func.func @transform_9(%arg0: i32) -> (i32, i32) {
    %c0_i32 = arith.constant 0 : i32
    %c0_i32_0 = arith.constant 0 : i32
    %c0_i32_1 = arith.constant 0 : i32
    return %c0_i32, %c0_i32_0 : i32, i32
  }
  func.func @transform_10(%arg0: i32) -> (i32, i32) {
    %c0_i32 = arith.constant 0 : i32
    %c0_i32_0 = arith.constant 0 : i32
    %c0_i32_1 = arith.constant 0 : i32
    return %c0_i32, %c0_i32_0 : i32, i32
  }
  func.func @transform_11(%arg0: i32) -> (i32, i32) {
    %c0_i32 = arith.constant 0 : i32
    %c0_i32_0 = arith.constant 0 : i32
    %c0_i32_1 = arith.constant 0 : i32
    return %c0_i32, %c0_i32_0 : i32, i32
  }
  func.func @transform_12(%arg0: i32) -> (i32, i32) {
    %c0_i32 = arith.constant 0 : i32
    %c0_i32_0 = arith.constant 0 : i32
    %c0_i32_1 = arith.constant 0 : i32
    return %c0_i32, %c0_i32_0 : i32, i32
  }
  func.func @transform_13(%arg0: i32) -> (i32, i32) {
    %c0_i32 = arith.constant 0 : i32
    %c0_i32_0 = arith.constant 0 : i32
    %c0_i32_1 = arith.constant 0 : i32
    return %c0_i32, %c0_i32_0 : i32, i32
  }
  func.func @transform_14(%arg0: i32) -> (i32, i32) {
    %c0_i32 = arith.constant 0 : i32
    %c0_i32_0 = arith.constant 0 : i32
    %c0_i32_1 = arith.constant 0 : i32
    return %c0_i32, %c0_i32_0 : i32, i32
  }
  func.func @transform_15(%arg0: i32) -> (i32, i32, i32) {
    %c0_i32 = arith.constant 0 : i32
    %c0_i32_0 = arith.constant 0 : i32
    %c0_i32_1 = arith.constant 0 : i32
    return %arg0, %c0_i32, %c0_i32_0 : i32, i32, i32
  }
}

</mosaic_0001>

<bundles_post_ra>
// kernel: tpu_custom_call.1
= control target key start
LH: loop header
LB: loop body
LE: loop exit
PB: predicated region body
PF: predicated region fallthrough
CT: control target
= control target key end

     0   :  { %s839_s0 = inlined_call_operand.vmem [shape: f32[1,8,256], index: 0, kind: input, shape index: {}]   ;;  %s840_s1 = inlined_call_operand.vmem [shape: f32[8,24], index: 1, kind: input, shape index: {}]   ;;  %s841_s2 = inlined_call_operand.vmem [shape: f32[8,1], index: 2, kind: input, shape index: {}]   ;;  %s842_s3 = inlined_call_operand.vmem [shape: f32[8,24], index: 3, kind: input, shape index: {}]   ;;  %s843_s4 = inlined_call_operand.vmem [shape: f32[8,1], index: 4, kind: input, shape index: {}]   ;;  %s844_s5 = inlined_call_operand.vmem [shape: f32[8,24], index: 5, kind: input, shape index: {}]   ;;  %s845_s6 = inlined_call_operand.vmem [shape: f32[8,1], index: 6, kind: input, shape index: {}]   ;;  %s846_s7 = inlined_call_operand.vmem [shape: f32[8,24], index: 7, kind: input, shape index: {}]   ;;  %s847_s8 = inlined_call_operand.vmem [shape: f32[8,1], index: 8, kind: input, shape index: {}]   ;;  %s848_s9 = inlined_call_operand.vmem [shape: f32[1,256], index: 9, kind: input, shape index: {}]   ;;  %s849_s10 = inlined_call_operand.vmem [shape: f32[1,256], index: 10, kind: input, shape index: {}]   ;;  %s850_s11 = inlined_call_operand.vmem [shape: f32[1,256], index: 11, kind: input, shape index: {}]   ;;  %s851_s12 = inlined_call_operand.vmem [shape: f32[1,256], index: 12, kind: input, shape index: {}]   ;;  %s852_s13 = inlined_call_operand.vmem [shape: f32[256,16], index: 13, kind: input, shape index: {}]   ;;  %s853_s14 = inlined_call_operand.vmem [shape: f32[1,16], index: 14, kind: input, shape index: {}]   ;;  %s854_s15 = inlined_call_operand.hbm [shape: f32[1,1,16], index: 15, kind: output, shape index: {}]  }
   0x1   :  { %v51_v0 = vld [vmem:[%s839_s0] sm:$0xff] }
   0x2   :  { %20 = vsyncpa [#allocation3], 0  ;;  %s523_s20 = smov 1   ;;  %s524_s21 = smov 127   ;;  %v52_v1 = vld [vmem:[%s839_s0 + $0x8] sm:$0xff]  ;;  %v86_v2 = vld [vmem:[%s841_s2] sm:$0xff]  ;;  %v59_v4 = vlaneseq }
   0x3   :  { %55 = vrot.lane.b32.xlu1 %v51_v0, %s523_s20  ;;  %71 = vrot.lane.b32.xlu0 %v51_v0, %s524_s21  ;;  %v525_v3 = vmov 0   ;;  %v54_v8 = vld [vmem:[%s849_s10] sm:$0x3]  ;;  %vm92_vm2 = vcmask 195584   ;;  %s527_s10 = smov 2   ;;  %s529_s18 = smov 4  }
   0x4   :  { %495 = vset.pattern.permute.xlu2 %v525_v3  ;;  %496 = vset.pattern.permute.xlu0 %v525_v3  ;;  %v622_v7 = vand.u32 127, %v59_v4  ;;  %v79_v9 = vperm.slane %v54_v8, 0  ;;  %v80_v10 = vperm.slane %v54_v8, 1  ;;  %v53_v11 = vld [vmem:[%s848_s9] sm:$0x3]  ;;  %s530_s29 = smov [#allocation2]  }
   0x5   :  { %89 = vperm.xlu2 %495, %v86_v2   ;;  %v636_v18 = vperm.slane %v53_v11, 0  ;;  %v638_v19 = vperm.slane %v53_v11, 1  ;;  %v85_v24 = vld [vmem:[%s840_s1] sm:$0xff]  ;;  %s526_s1 = smov 126   ;;  %s468_s30 = sshll.u32 %s530_s29, 4  ;;  %vm461_vm7 = vcmask 122880   ;;  %s469_s30 = int_to_ptr.vmem [resolvable:$true] %s468_s30 }
   0x6   :  { %vm75_vm0 = vcmp.lt.s32.totalorder %v622_v7, 127  ;;  %vm61_vm1 = vcmp.lt.s32.totalorder %v622_v7, 1  ;;  %v171_v38 = vld [vmem:[%s843_s4] sm:$0xff]  ;;  %vm160_vm3 = vcmp.lt.s32.totalorder %v622_v7, 126  ;;  %vm151_vm4 = vcmp.lt.s32.totalorder %v622_v7, 2  ;;  %s470_s4 = sshll.u32 %s854_s15, 4  ;;  %s471_s4 = int_to_ptr.hbm [resolvable:$true] %s470_s4 }
   0x7   :  { %v146_v39 = vld [vmem:[%s850_s11] sm:$0x3]  ;;  %vm244_vm5 = vcmp.lt.s32.totalorder %v622_v7, 124  ;;  %vm235_vm6 = vcmp.lt.s32.totalorder %v622_v7, 4  ;;  %v413_v7 = vld [vmem:[%s852_s13 + $0xc8] sm:$0xff] }
   0x8   :  { %v164_v40 = vperm.slane %v146_v39, 0  ;;  %v165_v41 = vperm.slane %v146_v39, 1  ;;  %v170_v54 = vld [vmem:[%s842_s3] sm:$0xff]  ;;  %s528_s3 = smov 124  }
   0x9   :  { %v255_v4 = vld [vmem:[%s845_s6] sm:$0xff] }
   0xa   :  { %v693_v8 = vld [vmem:[%s851_s12] sm:$0x3] }
   0xb   :  { %57 = vrot.lane.b32.xlu1 %v52_v1, %s523_s20  ;;  %73 = vrot.lane.b32.xlu0 %v52_v1, %s524_s21  ;;  %v416_v39 = vld [vmem:[%s852_s13 + $0xe0] sm:$0xff] }
  0x5f   :  { %v90_v25 = vpop.permute.xlu2 %89 }
  0x75   :  { %v56_v5 = vpop.permute.xlu1 %55  ;;  %v72_v6 = vpop.permute.xlu0 %71 }
  0x7d   :  { %v58_v12 = vpop.permute.xlu1 %57  ;;  %v74_v13 = vpop.permute.xlu0 %73 }
  0x7e   :  { %v76_v14 = vsel %vm75_vm0, %v72_v6, %v74_v13  ;;  %v77_v15 = vsel %vm75_vm0, %v74_v13, %v72_v6  ;;  %v62_v20 = vsel %vm61_vm1, %v56_v5, %v58_v12  ;;  %v63_v21 = vsel %vm61_vm1, %v58_v12, %v56_v5  ;;  %v323_v5 = vld [vmem:[%s847_s8] sm:$0xff] }
  0x7f   :  { %v83_v16 = vmul.f32 %v79_v9, %v76_v14  ;;  %v84_v17 = vmul.f32 %v80_v10, %v77_v15  ;;  %v69_v22 = vmul.f32 %v636_v18, %v63_v21  ;;  %v70_v23 = vmul.f32 %v638_v19, %v62_v20 }
  0x80   :  { %v248_v9 = vperm.slane %v693_v8, 0  ;;  %v249_v10 = vperm.slane %v693_v8, 1  ;;  %v405_v8 = vld [vmem:[%s852_s13 + $0x88] sm:$0xff] }
  0x81   :  { %109 = vmatpush.msra.mxu2 %v83_v16  ;;  %129 = vmatpush.msra.mxu3 %v84_v17 }
  0x83   :  { %110 = vmatpush.msra.mxu2 %v51_v0  ;;  %130 = vmatpush.msra.mxu3 %v52_v1 }
  0x85   :  { %111 = vmatpush.msra.mxu2 %v69_v22  ;;  %131 = vmatpush.msra.mxu3 %v70_v23 }
  0x86   :  { %479 = vmatmul.msk.f32.vlgmr.msra.gmra.mxu2 %vm92_vm2, %v85_v24  ;;  %480 = vmatmul.msk.f32.vlgmr.msra.gmra.mxu3 %vm92_vm2, %v85_v24  ;;  %v254_v24 = vld [vmem:[%s844_s5] sm:$0xff] }
 0x109   :  { %v113_v26 = vpop.f32.mrf.mxu2  ;;  %v133_v27 = vpop.f32.mrf.mxu3 }
 0x10a   :  { %v114_v28 = vadd.f32 %v113_v26, %v90_v25  ;;  %v134_v29 = vadd.f32 %v133_v27, %v90_v25 }
 0x10c   :  { %138 = vrot.lane.b32.xlu0 %v134_v29, %s524_s21  ;;  %136 = vrot.lane.b32.xlu2 %v114_v28, %s524_s21 }
 0x166   :  { %v137_v30 = vpop.permute.xlu2 %136 }
 0x17e   :  { %v139_v31 = vpop.permute.xlu0 %138 }
 0x17f   :  { %v140_v32 = vsel %vm75_vm0, %v137_v30, %v139_v31  ;;  %v141_v33 = vsel %vm75_vm0, %v139_v31, %v137_v30 }
 0x180   :  { %v142_v34 = vmax.f32 %v114_v28, %v140_v32  ;;  %v143_v35 = vmax.f32 %v134_v29, %v141_v33  ;;  %v403_v32 = vld [vmem:[%s852_s13 + $0x78] sm:$0xff] }
 0x181   :  { %v419_v33 = vld [vmem:[%s852_s13 + $0xf8] sm:$0xff]  ;;  %421 = vmatpush.msra.mxu0 %v403_v32 }
 0x182   :  { %v144_v36 = vmax.f32 %v142_v34, 0.0  ;;  %v145_v37 = vmax.f32 %v143_v35, 0.0  ;;  %v402_v34 = vld [vmem:[%s852_s13 + $0x70] sm:$0xff]  ;;  %441 = vmatpush.msra.mxu1 %v419_v33 }
 0x183   :  { %v418_v35 = vld [vmem:[%s852_s13 + $0xf0] sm:$0xff]  ;;  %422 = vmatpush.msra.mxu0 %v402_v34  ;;  %v420_v34 = vld [vmem:[%s853_s14] sm:$0x1] }
 0x184   :  { %158 = vrot.lane.b32.xlu2 %v145_v37, %s526_s1  ;;  %147 = vrot.lane.b32.xlu0 %v144_v36, %s527_s10 }
 0x185   :  { %156 = vrot.lane.b32.xlu1 %v144_v36, %s526_s1  ;;  %442 = vmatpush.msra.mxu1 %v418_v35 }
 0x18c   :  { %174 = vperm.xlu2 %495, %v171_v38   ;;  %v400_v38 = vld [vmem:[%s852_s13 + $0x60] sm:$0xff] }
 0x18d   :  { %149 = vrot.lane.b32.xlu1 %v145_v37, %s527_s10 }
 0x1de   :  { %v159_v42 = vpop.permute.xlu2 %158 }
 0x1e6   :  { %v175_v55 = vpop.permute.xlu2 %174 }
 0x1f6   :  { %v148_v48 = vpop.permute.xlu0 %147 }
 0x1f7   :  { %v157_v43 = vpop.permute.xlu1 %156 }
 0x1f8   :  { %v161_v44 = vsel %vm160_vm3, %v157_v43, %v159_v42  ;;  %v162_v45 = vsel %vm160_vm3, %v159_v42, %v157_v43  ;;  %v398_v42 = vld [vmem:[%s852_s13 + $0x50] sm:$0xff] }
 0x1f9   :  { %v168_v46 = vmul.f32 %v164_v40, %v161_v44  ;;  %v169_v47 = vmul.f32 %v165_v41, %v162_v45  ;;  %v399_v40 = vld [vmem:[%s852_s13 + $0x58] sm:$0xff]  ;;  %v414_v43 = vld [vmem:[%s852_s13 + $0xd0] sm:$0xff] }
 0x1fa   :  { %v415_v41 = vld [vmem:[%s852_s13 + $0xd8] sm:$0xff] }
 0x1fb   :  { %193 = vmatpush.msrb.mxu2 %v168_v46  ;;  %213 = vmatpush.msrb.mxu3 %v169_v47 }
 0x1fd   :  { %194 = vmatpush.msrb.mxu2 %v144_v36  ;;  %214 = vmatpush.msrb.mxu3 %v145_v37  ;;  %v401_v36 = vld [vmem:[%s852_s13 + $0x68] sm:$0xff] }
 0x1fe   :  { %v417_v37 = vld [vmem:[%s852_s13 + $0xe8] sm:$0xff]  ;;  %423 = vmatpush.msra.mxu0 %v401_v36 }
 0x1ff   :  { %v150_v49 = vpop.permute.xlu1 %149  ;;  %443 = vmatpush.msra.mxu1 %v417_v37 }
 0x200   :  { %v152_v50 = vsel %vm151_vm4, %v148_v48, %v150_v49  ;;  %v153_v51 = vsel %vm151_vm4, %v150_v49, %v148_v48  ;;  %424 = vmatpush.msra.mxu0 %v400_v38 }
 0x201   :  { %v154_v52 = vmul.f32 %v153_v51, %v636_v18  ;;  %v155_v53 = vmul.f32 %v152_v50, %v638_v19  ;;  %444 = vmatpush.msra.mxu1 %v416_v39 }
 0x202   :  { %425 = vmatpush.msra.mxu0 %v399_v40 }
 0x203   :  { %195 = vmatpush.msrb.mxu2 %v154_v52  ;;  %215 = vmatpush.msrb.mxu3 %v155_v53 }
 0x204   :  { %481 = vmatmul.msk.f32.vlgmr.msrb.gmra.mxu2 %vm92_vm2, %v170_v54  ;;  %482 = vmatmul.msk.f32.vlgmr.msrb.gmra.mxu3 %vm92_vm2, %v170_v54 }
 0x205   :  { %445 = vmatpush.msra.mxu1 %v415_v41  ;;  %426 = vmatpush.msra.mxu0 %v398_v42 }
 0x207   :  { %446 = vmatpush.msra.mxu1 %v414_v43 }
 0x209   :  { %447 = vmatpush.msra.mxu1 %v413_v7 }
 0x287   :  { %v197_v56 = vpop.f32.mrf.mxu2  ;;  %v217_v57 = vpop.f32.mrf.mxu3 }
 0x288   :  { %v198_v58 = vadd.f32 %v197_v56, %v175_v55  ;;  %v218_v59 = vadd.f32 %v217_v57, %v175_v55  ;;  %v322_v56 = vld [vmem:[%s846_s7] sm:$0xff]  ;;  %v397_v57 = vld [vmem:[%s852_s13 + $0x48] sm:$0xff] }
 0x289   :  { %427 = vmatpush.msra.mxu0 %v397_v57 }
 0x28a   :  { %220 = vrot.lane.b32.xlu0 %v198_v58, %s526_s1  ;;  %222 = vrot.lane.b32.xlu1 %v218_v59, %s526_s1 }
 0x2fc   :  { %v221_v60 = vpop.permute.xlu0 %220  ;;  %v223_v61 = vpop.permute.xlu1 %222 }
 0x2fd   :  { %v224_v62 = vsel %vm160_vm3, %v221_v60, %v223_v61  ;;  %v225_v63 = vsel %vm160_vm3, %v223_v61, %v221_v60  ;;  %v394_v60 = vld [vmem:[%s852_s13 + $0x30] sm:$0xff] }
 0x2fe   :  { %v226_v0 = vmax.f32 %v198_v58, %v224_v62  ;;  %v227_v1 = vmax.f32 %v218_v59, %v225_v63  ;;  %v395_v58 = vld [vmem:[%s852_s13 + $0x38] sm:$0xff]  ;;  %v410_v61 = vld [vmem:[%s852_s13 + $0xb0] sm:$0xff]  ;;  %v393_v62 = vld [vmem:[%s852_s13 + $0x28] sm:$0xff] }
 0x2ff   :  { %v411_v59 = vld [vmem:[%s852_s13 + $0xb8] sm:$0xff]  ;;  %v409_v63 = vld [vmem:[%s852_s13 + $0xa8] sm:$0xff] }
 0x300   :  { %v228_v2 = vmax.f32 %v226_v0, 0.0  ;;  %v229_v3 = vmax.f32 %v227_v1, 0.0  ;;  %v392_v0 = vld [vmem:[%s852_s13 + $0x20] sm:$0xff] }
 0x301   :  { %v408_v1 = vld [vmem:[%s852_s13 + $0xa0] sm:$0xff] }
 0x302   :  { %242 = vrot.lane.b32.xlu0 %v229_v3, %s528_s3  ;;  %231 = vrot.lane.b32.xlu1 %v228_v2, %s529_s18 }
 0x303   :  { %240 = vrot.lane.b32.xlu2 %v228_v2, %s528_s3 }
 0x30a   :  { %258 = vperm.xlu0 %496, %v255_v4   ;;  %v390_v4 = vld [vmem:[%s852_s13 + $0x10] sm:$0xff] }
 0x30b   :  { %233 = vrot.lane.b32.xlu2 %v229_v3, %s529_s18 }
 0x312   :  { %326 = vperm.xlu0 %496, %v323_v5   ;;  %v406_v5 = vld [vmem:[%s852_s13 + $0x90] sm:$0xff] }
 0x35d   :  { %v241_v6 = vpop.permute.xlu2 %240 }
 0x365   :  { %v234_v15 = vpop.permute.xlu2 %233 }
 0x374   :  { %v243_v11 = vpop.permute.xlu0 %242  ;;  %v232_v12 = vpop.permute.xlu1 %231 }
 0x375   :  { %v245_v13 = vsel %vm244_vm5, %v241_v6, %v243_v11  ;;  %v246_v14 = vsel %vm244_vm5, %v243_v11, %v241_v6  ;;  %v236_v20 = vsel %vm235_vm6, %v232_v12, %v234_v15  ;;  %v237_v21 = vsel %vm235_vm6, %v234_v15, %v232_v12  ;;  %v389_v6 = vld [vmem:[%s852_s13 + $0x8] sm:$0xff] }
 0x376   :  { %v252_v16 = vmul.f32 %v248_v9, %v245_v13  ;;  %v253_v17 = vmul.f32 %v249_v10, %v246_v14  ;;  %v238_v22 = vmul.f32 %v237_v21, %v636_v18  ;;  %v239_v23 = vmul.f32 %v236_v20, %v638_v19 }
 0x378   :  { %277 = vmatpush.msra.mxu2 %v252_v16  ;;  %297 = vmatpush.msra.mxu3 %v253_v17 }
 0x37a   :  { %278 = vmatpush.msra.mxu2 %v228_v2  ;;  %298 = vmatpush.msra.mxu3 %v229_v3  ;;  %v391_v2 = vld [vmem:[%s852_s13 + $0x18] sm:$0xff] }
 0x37b   :  { %v407_v3 = vld [vmem:[%s852_s13 + $0x98] sm:$0xff] }
 0x37c   :  { %279 = vmatpush.msra.mxu2 %v238_v22  ;;  %299 = vmatpush.msra.mxu3 %v239_v23  ;;  %v259_v25 = vpop.permute.xlu0 %258 }
 0x37d   :  { %483 = vmatmul.msk.f32.vlgmr.msra.gmra.mxu2 %vm92_vm2, %v254_v24  ;;  %484 = vmatmul.msk.f32.vlgmr.msra.gmra.mxu3 %vm92_vm2, %v254_v24 }
 0x384   :  { %v327_v11 = vpop.permute.xlu0 %326 }
 0x400   :  { %v281_v26 = vpop.f32.mrf.mxu2  ;;  %v301_v27 = vpop.f32.mrf.mxu3 }
 0x401   :  { %v282_v28 = vadd.f32 %v281_v26, %v259_v25  ;;  %v302_v29 = vadd.f32 %v301_v27, %v259_v25 }
 0x403   :  { %v304_v30 = vmax.f32 %v282_v28, 0.0  ;;  %v305_v31 = vmax.f32 %v302_v29, 0.0 }
 0x405   :  { %314 = vrot.lane.b32.xlu1 %v304_v30, %s528_s3  ;;  %316 = vrot.lane.b32.xlu2 %v305_v31, %s528_s3 }
 0x40d   :  { %306 = vrot.lane.b32.xlu1 %v304_v30, %s529_s18  ;;  %308 = vrot.lane.b32.xlu2 %v305_v31, %s529_s18 }
 0x45f   :  { %v317_v44 = vpop.permute.xlu2 %316 }
 0x467   :  { %v309_v50 = vpop.permute.xlu2 %308 }
 0x477   :  { %v315_v45 = vpop.permute.xlu1 %314 }
 0x478   :  { %v318_v46 = vsel %vm244_vm5, %v315_v45, %v317_v44  ;;  %v319_v47 = vsel %vm244_vm5, %v317_v44, %v315_v45 }
 0x479   :  { %v320_v48 = vmul.f32 %v318_v46, %v248_v9  ;;  %v321_v49 = vmul.f32 %v319_v47, %v249_v10  ;;  %v388_v9 = vld [vmem:[%s852_s13] sm:$0xff] }
 0x47a   :  { %v404_v10 = vld [vmem:[%s852_s13 + $0x80] sm:$0xff] }
 0x47b   :  { %345 = vmatpush.msrb.mxu2 %v320_v48  ;;  %365 = vmatpush.msrb.mxu3 %v321_v49 }
 0x47d   :  { %346 = vmatpush.msrb.mxu2 %v304_v30  ;;  %366 = vmatpush.msrb.mxu3 %v305_v31 }
 0x47f   :  { %v307_v51 = vpop.permute.xlu1 %306 }
 0x480   :  { %v310_v52 = vsel %vm235_vm6, %v307_v51, %v309_v50  ;;  %v311_v53 = vsel %vm235_vm6, %v309_v50, %v307_v51 }
 0x481   :  { %v312_v54 = vmul.f32 %v311_v53, %v636_v18  ;;  %v313_v55 = vmul.f32 %v310_v52, %v638_v19  ;;  %v396_v18 = vld [vmem:[%s852_s13 + $0x40] sm:$0xff] }
 0x482   :  { %v412_v19 = vld [vmem:[%s852_s13 + $0xc0] sm:$0xff]  ;;  %428 = vmatpush.msra.mxu0 %v396_v18 }
 0x483   :  { %347 = vmatpush.msrb.mxu2 %v312_v54  ;;  %367 = vmatpush.msrb.mxu3 %v313_v55 }
 0x484   :  { %485 = vmatmul.msk.f32.vlgmr.msrb.gmra.mxu2 %vm92_vm2, %v322_v56  ;;  %486 = vmatmul.msk.f32.vlgmr.msrb.gmra.mxu3 %vm92_vm2, %v322_v56 }
 0x485   :  { %448 = vmatpush.msra.mxu1 %v412_v19  ;;  %429 = vmatpush.msra.mxu0 %v395_v58 }
 0x487   :  { %449 = vmatpush.msra.mxu1 %v411_v59  ;;  %430 = vmatpush.msra.mxu0 %v394_v60 }
 0x489   :  { %450 = vmatpush.msra.mxu1 %v410_v61  ;;  %431 = vmatpush.msra.mxu0 %v393_v62 }
 0x48b   :  { %451 = vmatpush.msra.mxu1 %v409_v63  ;;  %432 = vmatpush.msra.mxu0 %v392_v0 }
 0x48d   :  { %452 = vmatpush.msra.mxu1 %v408_v1  ;;  %433 = vmatpush.msra.mxu0 %v391_v2 }
 0x48f   :  { %453 = vmatpush.msra.mxu1 %v407_v3  ;;  %434 = vmatpush.msra.mxu0 %v390_v4 }
 0x491   :  { %454 = vmatpush.msra.mxu1 %v406_v5  ;;  %435 = vmatpush.msra.mxu0 %v389_v6 }
 0x493   :  { %455 = vmatpush.msra.mxu1 %v405_v8  ;;  %436 = vmatpush.msra.mxu0 %v388_v9 }
 0x495   :  { %456 = vmatpush.msra.mxu1 %v404_v10 }
 0x507   :  { %v349_v12 = vpop.f32.mrf.mxu2  ;;  %v369_v13 = vpop.f32.mrf.mxu3 }
 0x508   :  { %v350_v14 = vadd.f32 %v349_v12, %v327_v11  ;;  %v370_v15 = vadd.f32 %v369_v13, %v327_v11 }
 0x50a   :  { %v372_v16 = vmax.f32 %v350_v14, 0.0  ;;  %v373_v17 = vmax.f32 %v370_v15, 0.0 }
 0x50c   :  { %v374_v20 = vrot.slane %v372_v16, 4  ;;  %v380_v21 = vrot.slane %v373_v17, 4 }
 0x50e   :  { %v375_v22 = vadd.f32 %v374_v20, %v372_v16  ;;  %v381_v23 = vadd.f32 %v380_v21, %v373_v17 }
 0x510   :  { %v376_v24 = vrot.slane %v375_v22, 2  ;;  %v382_v25 = vrot.slane %v381_v23, 2 }
 0x512   :  { %v377_v26 = vadd.f32 %v376_v24, %v375_v22  ;;  %v383_v27 = vadd.f32 %v382_v25, %v381_v23 }
 0x514   :  { %v378_v28 = vrot.slane %v377_v26, 1  ;;  %v384_v29 = vrot.slane %v383_v27, 1 }
 0x516   :  { %v379_v30 = vadd.f32 %v378_v28, %v377_v26  ;;  %v385_v31 = vadd.f32 %v384_v29, %v383_v27 }
 0x518   :  { %v386_v32 = vmul.f32 0.125, %v379_v30  ;;  %v387_v33 = vmul.f32 0.125, %v385_v31 }
 0x51a   :  { %437 = vmatmul.f32.vlgmr.msra.gmra.mxu0 %v386_v32  ;;  %457 = vmatmul.f32.vlgmr.msra.gmra.mxu1 %v387_v33 }
 0x597   :  { %v438_v35 = vpop.f32.mrf.mxu0  ;;  %v458_v37 = vpop.f32.mrf.mxu1 }
 0x598   :  { %v439_v36 = vadd.f32 %v438_v35, %v420_v34 }
 0x59a   :  { %v459_v38 = vadd.f32 %v458_v37, %v439_v36 }
 0x59c   :  { %462 = vst.msk [vmem:[#allocation2] sm:$0x1] %vm461_vm7, %v459_v38 }
 0x59d   :  { %473 = dma.vmem_to_hbm [thread:$0]  %s469_s30, 16, %s471_s4, [#allocation3]  }
 0x59e   :  { %521 = dma.done.wait [#allocation3], 16  }
 0x59f   :  { %522 = vsyncadd [#allocation3], 4294967280 }
 0x5a0   :  { %478 = vsyncpa [#allocation3], 1 }

</bundles_post_ra>
